<compile_context>
chip_gen: v6e
topology: v6e:2x2x1
jax: 0.10.0
libtpu: 0.0.40
codegen_flags: <defaults>
</compile_context>

<pallas_src>
import jax
import jax.numpy as jnp
from jax.experimental import pallas as pl
from jax.experimental.pallas import tpu as pltpu


def _round_up(x, m):
    return ((x + m - 1) // m) * m


# Per-grid-step VMEM budget used when deciding whether to take the whole K
# extent in a single stripe.  Conservative for v7x (64 MiB physical per TC).
_FULL_K_VMEM_BUDGET = 24 * 1024 * 1024
_VMEM_LIMIT_BYTES = 48 * 1024 * 1024


def _make_kernel(num_in, num_out):
    """Kernel for out[o, k, j] = sum_i W[o,i] * x[i, j, k] + b[o] on one tile."""
    # NOTE: the Python loops unroll at trace time; fine for Linear(2, 2)'s tiny
    # feature counts, but would bloat the kernel for large I/O.
    if num_in < num_out:
        # Fewer inputs than outputs: transpose the I input tiles once, FMA after.
        def kernel(w_ref, b_ref, x_ref, o_ref):
            # w_ref: (O, I) f32 SMEM, b_ref: (O,) f32 SMEM
            # x_ref: (I, tJ, tK) VMEM tile of x1 in its native (I, J, K) layout
            # o_ref: (O, tK, tJ) VMEM tile of the (O, K, J) output
            xt = [jnp.transpose(x_ref[i]) for i in range(num_in)]  # (tK, tJ)
            for o in range(num_out):
                acc = xt[0] * w_ref[o, 0]
                for i in range(1, num_in):
                    acc = acc + xt[i] * w_ref[o, i]
                o_ref[o] = acc + b_ref[o]
    else:
        # Transpose-after-FMA: accumulate in native (tJ, tK) layout, then do a
        # single XLU transpose per output feature.  Only one (tJ, tK) temporary
        # is live at a time -> minimal VMEM scratch.  The transpose rides the
        # XLU slot, which is idle in this memory-bound kernel.
        def kernel(w_ref, b_ref, x_ref, o_ref):
            for o in range(num_out):
                acc = x_ref[0] * w_ref[o, 0]
                for i in range(1, num_in):
                    acc = acc + x_ref[i] * w_ref[o, i]
                o_ref[o] = jnp.transpose(acc) + b_ref[o]
    return kernel


def model_forward(x1, weight, bias, *, tile_j=512, tile_k=512):
    """x1: (I, J, K) f32; weight: (O, I); bias: (O,).  Returns (O, K, J) f32."""
    I, J, K = x1.shape
    O = weight.shape[0]

    # Lane-dense tiles: all kernel-facing last dims (tk for the input block,
    # tj for the output block) are multiples of 128.  Ragged edges (J or K not
    # a tile multiple) are handled by Pallas: OOB output lanes are masked on
    # writeback, OOB input reads are padded -- and since out[o,k,j] depends
    # only on x[:,j,k], padded garbage never leaks into valid elements.
    tile_j = max(128, _round_up(tile_j, 128))
    tile_k = max(128, _round_up(tile_k, 128))
    tj = min(tile_j, _round_up(J, 128))

    # The x-tile DMA is contiguous along K: take the whole K extent in one
    # stripe when it fits the VMEM budget (long bursts, one fewer grid dim),
    # but only if the J grid still has >=2 parallel blocks so both TensorCores
    # of a megacore / v7x chip keep getting work.
    k_full = _round_up(K, 128)
    bytes_per_k = 4 * tj * (2 * I + 2 * O + 2)  # dbl-buffered in/out + temps
    if k_full * bytes_per_k <= _FULL_K_VMEM_BUDGET and (
            pl.cdiv(J, tj) >= 2 or k_full <= tile_k):
        tk = k_full
    else:
        tk = min(tile_k, k_full)

    grid = (pl.cdiv(K, tk), pl.cdiv(J, tj))

    return pl.pallas_call(
        _make_kernel(I, O),
        out_shape=jax.ShapeDtypeStruct((O, K, J), jnp.float32),
        grid=grid,
        in_specs=[
            # Tiny (O, I) weight and (O,) bias stay in SMEM (constant index,
            # negligible traffic): read as scalars by the VPU FMAs.
            pl.BlockSpec(memory_space=pltpu.MemorySpace.SMEM),
            pl.BlockSpec(memory_space=pltpu.MemorySpace.SMEM),
            # x1 stays in its native (I, J, K) layout; the (J,K)->(K,J)
            # permutation is fused per-tile inside the kernel.
            pl.BlockSpec((I, tj, tk), lambda k, j: (0, j, k)),
        ],
        out_specs=pl.BlockSpec((O, tk, tj), lambda k, j: (0, k, j)),
        compiler_params=pltpu.CompilerParams(
            dimension_semantics=("parallel", "parallel"),
            vmem_limit_bytes=_VMEM_LIMIT_BYTES),
        # Purely HBM-bound (~2 FLOPs/element): hint XLA's scheduler.
        cost_estimate=pl.CostEstimate(
            flops=2 * I * O * J * K,
            transcendentals=0,
            bytes_accessed=4 * (I + O) * J * K),
    )(weight.astype(jnp.float32), bias.astype(jnp.float32), x1)


if __name__ == "__main__":
    key = jax.random.PRNGKey(0)
    k_x, k_w, k_b = jax.random.split(key, 3)

    # Shapes consistent with the module: in_features = out_features = 2.
    # NOTE: for shapes this tiny, plain XLA would beat any Pallas launch; the
    # kernel is written for (and scales to) large J*K.
    I, J, K = 2, 16, 32        # x1: (in_features, "batch", "seq")
    O = 2

    x1 = jax.random.normal(k_x, (I, J, K), dtype=jnp.float32)

    # Deterministic Linear(2, 2) params (PyTorch-style uniform init bound).
    bound = 1.0 / jnp.sqrt(jnp.float32(I))
    weight = jax.random.uniform(k_w, (O, I), jnp.float32, -bound, bound)
    bias = jax.random.uniform(k_b, (O,), jnp.float32, -bound, bound)

    out = model_forward(x1, weight, bias)
    out = jax.block_until_ready(out)

    # Reference check (pure JAX) of the same semantics.
    ref = jnp.einsum("oi,ijk->okj", weight, x1) + bias[:, None, None]
    assert out.shape == (O, K, J)
    assert jnp.allclose(out, ref, atol=1e-5, rtol=1e-5)

    print("KERNEL_OK")
</pallas_src>

<mosaic_0001>
module attributes {stable_mosaic.version = 11 : i64} {
  func.func @kernel(%arg0: i32, %arg1: i32, %arg2: memref<2x2xf32, #tpu.memory_space<smem>>, %arg3: memref<2xf32, #tpu.memory_space<smem>>, %arg4: memref<2x128x128xf32, #tpu.memory_space<vmem>>, %arg5: memref<2x128x128xf32, #tpu.memory_space<vmem>>) attributes {dimension_semantics = [#tpu.dimension_semantics<parallel>, #tpu.dimension_semantics<parallel>], iteration_bounds = array<i64: 1, 1>, scalar_prefetch = 0 : i64, scratch_operands = 0 : i64, tpu.core_type = #tpu.core_type<tc>, window_params = [{transform_indices = @transform_0, window_bounds = array<i64: 2, 2>}, {transform_indices = @transform_1, window_bounds = array<i64: 2>}, {transform_indices = @transform_2, window_bounds = array<i64: 2, 128, 128>}, {transform_indices = @transform_3, window_bounds = array<i64: 2, 128, 128>}]} {
    %c0 = arith.constant 0 : index
    %c0_0 = arith.constant 0 : index
    %c0_1 = arith.constant 0 : index
    %0 = vector.load %arg4[%c0, %c0_0, %c0_1] : memref<2x128x128xf32, #tpu.memory_space<vmem>>, vector<1x128x128xf32>
    %1 = vector.shape_cast %0 : vector<1x128x128xf32> to vector<128x128xf32>
    %c0_2 = arith.constant 0 : index
    %c0_3 = arith.constant 0 : index
    %2 = memref.load %arg2[%c0_2, %c0_3] : memref<2x2xf32, #tpu.memory_space<smem>>
    %3 = vector.broadcast %2 : f32 to vector<128x128xf32>
    %4 = arith.mulf %1, %3 : vector<128x128xf32>
    %c1 = arith.constant 1 : index
    %c0_4 = arith.constant 0 : index
    %c0_5 = arith.constant 0 : index
    %5 = vector.load %arg4[%c1, %c0_4, %c0_5] : memref<2x128x128xf32, #tpu.memory_space<vmem>>, vector<1x128x128xf32>
    %6 = vector.shape_cast %5 : vector<1x128x128xf32> to vector<128x128xf32>
    %c0_6 = arith.constant 0 : index
    %c1_7 = arith.constant 1 : index
    %7 = memref.load %arg2[%c0_6, %c1_7] : memref<2x2xf32, #tpu.memory_space<smem>>
    %8 = vector.broadcast %7 : f32 to vector<128x128xf32>
    %9 = arith.mulf %6, %8 : vector<128x128xf32>
    %10 = arith.addf %4, %9 : vector<128x128xf32>
    %11 = tpu.transpose %10, [1, 0] : vector<128x128xf32> -> vector<128x128xf32>
    %c0_8 = arith.constant 0 : index
    %12 = memref.load %arg3[%c0_8] : memref<2xf32, #tpu.memory_space<smem>>
    %13 = vector.broadcast %12 : f32 to vector<128x128xf32>
    %14 = arith.addf %11, %13 : vector<128x128xf32>
    %c0_9 = arith.constant 0 : index
    %c0_10 = arith.constant 0 : index
    %c0_11 = arith.constant 0 : index
    %15 = vector.load %arg5[%c0_9, %c0_10, %c0_11] : memref<2x128x128xf32, #tpu.memory_space<vmem>>, vector<1x128x128xf32>
    %16 = vector.shape_cast %15 : vector<1x128x128xf32> to vector<128x128xf32>
    %17 = vector.shape_cast %14 : vector<128x128xf32> to vector<1x128x128xf32>
    tpu.vector_store %arg5[%c0_9, %c0_10, %c0_11], %17 {strides = array<i32>} : memref<2x128x128xf32, #tpu.memory_space<vmem>>, vector<1x128x128xf32>,
    %c0_12 = arith.constant 0 : index
    %c0_13 = arith.constant 0 : index
    %c0_14 = arith.constant 0 : index
    %18 = vector.load %arg4[%c0_12, %c0_13, %c0_14] : memref<2x128x128xf32, #tpu.memory_space<vmem>>, vector<1x128x128xf32>
    %19 = vector.shape_cast %18 : vector<1x128x128xf32> to vector<128x128xf32>
    %c1_15 = arith.constant 1 : index
    %c0_16 = arith.constant 0 : index
    %20 = memref.load %arg2[%c1_15, %c0_16] : memref<2x2xf32, #tpu.memory_space<smem>>
    %21 = vector.broadcast %20 : f32 to vector<128x128xf32>
    %22 = arith.mulf %19, %21 : vector<128x128xf32>
    %c1_17 = arith.constant 1 : index
    %c0_18 = arith.constant 0 : index
    %c0_19 = arith.constant 0 : index
    %23 = vector.load %arg4[%c1_17, %c0_18, %c0_19] : memref<2x128x128xf32, #tpu.memory_space<vmem>>, vector<1x128x128xf32>
    %24 = vector.shape_cast %23 : vector<1x128x128xf32> to vector<128x128xf32>
    %c1_20 = arith.constant 1 : index
    %c1_21 = arith.constant 1 : index
    %25 = memref.load %arg2[%c1_20, %c1_21] : memref<2x2xf32, #tpu.memory_space<smem>>
    %26 = vector.broadcast %25 : f32 to vector<128x128xf32>
    %27 = arith.mulf %24, %26 : vector<128x128xf32>
    %28 = arith.addf %22, %27 : vector<128x128xf32>
    %29 = tpu.transpose %28, [1, 0] : vector<128x128xf32> -> vector<128x128xf32>
    %c1_22 = arith.constant 1 : index
    %30 = memref.load %arg3[%c1_22] : memref<2xf32, #tpu.memory_space<smem>>
    %31 = vector.broadcast %30 : f32 to vector<128x128xf32>
    %32 = arith.addf %29, %31 : vector<128x128xf32>
    %c1_23 = arith.constant 1 : index
    %c0_24 = arith.constant 0 : index
    %c0_25 = arith.constant 0 : index
    %33 = vector.load %arg5[%c1_23, %c0_24, %c0_25] : memref<2x128x128xf32, #tpu.memory_space<vmem>>, vector<1x128x128xf32>
    %34 = vector.shape_cast %33 : vector<1x128x128xf32> to vector<128x128xf32>
    %35 = vector.shape_cast %32 : vector<128x128xf32> to vector<1x128x128xf32>
    tpu.vector_store %arg5[%c1_23, %c0_24, %c0_25], %35 {strides = array<i32>} : memref<2x128x128xf32, #tpu.memory_space<vmem>>, vector<1x128x128xf32>,
    return
  }
  func.func @transform_0(%arg0: i32, %arg1: i32) -> (i32, i32) {
    %c0_i32 = arith.constant 0 : i32
    %c0_i32_0 = arith.constant 0 : i32
    %c0_i32_1 = arith.constant 0 : i32
    return %c0_i32, %c0_i32_0 : i32, i32
  }
  func.func @transform_1(%arg0: i32, %arg1: i32) -> i32 {
    %c0_i32 = arith.constant 0 : i32
    %c0_i32_0 = arith.constant 0 : i32
    return %c0_i32 : i32
  }
  func.func @transform_2(%arg0: i32, %arg1: i32) -> (i32, i32, i32) {
    %c0_i32 = arith.constant 0 : i32
    %c0_i32_0 = arith.constant 0 : i32
    return %c0_i32, %arg1, %arg0 : i32, i32, i32
  }
  func.func @transform_3(%arg0: i32, %arg1: i32) -> (i32, i32, i32) {
    %c0_i32 = arith.constant 0 : i32
    %c0_i32_0 = arith.constant 0 : i32
    return %c0_i32, %arg0, %arg1 : i32, i32, i32
  }
}

</mosaic_0001>

<bundles_post_ra>
// kernel: tpu_custom_call.1
= control target key start
LH: loop header
LB: loop body
LE: loop exit
PB: predicated region body
PF: predicated region fallthrough
CT: control target
= control target key end

     0   :  { %8 = vsyncpa [#allocation4], 0  ;;  %s627_s0 = inlined_call_operand.hbm [shape: f32[2,2], index: 0, kind: input, shape index: {}]   ;;  %s628_s1 = inlined_call_operand.vmem [shape: f32[2], index: 1, kind: input, shape index: {}]   ;;  %s629_s2 = inlined_call_operand.hbm [shape: f32[2,16,32], index: 2, kind: input, shape index: {}]   ;;  %s630_s3 = inlined_call_operand.vmem [shape: f32[2,32,16], index: 3, kind: output, shape index: {}]  }
   0x1   :  { %9 = vsyncpa [#allocation5], 0 }
   0x2   :  { %10 = vsyncpa [#allocation3], 0  ;;  %s25_s14 = sshll.u32 %s628_s1, 4  ;;  %s492_s15 = smov [#allocation2]   ;;  %s26_s14 = int_to_ptr.vmem [resolvable:$true] %s25_s14 }
   0x3   :  { %18 = dma.hbm_to_smem %s627_s0, 32, %s492_s15, [#allocation4]  }
   0x4   :  { %s474_s18 = scalar_lea.vmem %s26_s14, 16  ;;  %p479_p1 = scmp.lt.s32.totalorder %s26_s14, %s26_s14 }
   0x5   :  { %p475_p0 = scmp.ne.s32.totalorder %s26_s14, %s474_s18  ;;  %p480_p2 = scmp.lt.s32.totalorder %s474_s18, %s474_s18 }
   0x7   :  { %p481_p3 = por %p480_p2, %p479_p1 }
   0x9   :  { %p482_p4 = pnand %p481_p3, %p475_p0 }
   0xb   :  { %485 = shalt.err (!%p482_p4)
}
   0xc   :  { %s493_s19 = smov [#allocation6]  }
   0xd   :  { %28 = dma.vmem_to_smem %s26_s14, 16, %s493_s19, [#allocation5]  }
   0xe   :  { %33 = vsyncadd [#allocation3], 3584  ;;  %s38_s20 = sld [smem:[#allocation0]]   ;;  %s494_s21 = smov [#allocation7]  }
   0xf   :  { %s46_s22 = sshll.u32 %s494_s21, 4  ;;  %s495_s1 = smov 256   ;;  %s47_s22 = int_to_ptr.vmem [resolvable:$true] %s46_s22 }
  0x10   :  { %53 = sst [smem:[#allocation10]] %s495_s1  ;;  %s496_s23 = smov 2048  }
  0x11   :  { %55 = sst [smem:[#allocation10 + $0x1]] %s496_s23  ;;  %s497_s0 = smov 2  }
  0x12   :  { %57 = sst [smem:[#allocation10 + $0x2]] %s497_s0  ;;  %s498_s25 = smov 128  }
  0x13   :  { %59 = sst [smem:[#allocation10 + $0x3]] %s498_s25  ;;  %s499_s27 = smov 8  }
  0x14   :  { %s450_s24 = sshll.u32 %s38_s20, 26  ;;  %61 = sst [smem:[#allocation10 + $0x4]] %s498_s25 }
  0x15   :  { %s451_s26 = sadd.s32 134217728, %s450_s24  ;;  %63 = sst [smem:[#allocation10 + $0x5]] %s499_s27 }
  0x16   :  { %s500_s28 = smov [#allocation3]   ;;  %s501_s29 = smov 131072  }
  0x17   :  { %65 = dma.general %s629_s2, 512, %s47_s22, %s500_s28, %s501_s29, [#allocation10], %s451_s26, 0  }
  0x18   :  { %486 = dma.done.wait [#allocation4], 32  }
  0x19   :  { %487 = vsyncadd [#allocation4], 4294967264 }
  0x1a   :  { %488 = dma.done.wait [#allocation5], 16  }
  0x1b   :  { %489 = vsyncadd [#allocation5], 4294967280 }
  0x1c   :  { %490 = dma.done.wait [#allocation3], 4096  }
  0x1d   :  { %491 = vsyncadd [#allocation3], 4294963200 }
  0x1e   :  { %75 = sfence }
  0x1f   :  { %s453_s5 = sld [smem:[#allocation2 + $0x80]]  ;;  %v227_v0 = vld [vmem:[#allocation7] sm:$0xff]  ;;  %v228_v2 = vld [vmem:[#allocation7 + $0x8] sm:$0xff]  ;;  %v229_v13 = vld [vmem:[#allocation7 + $0x10] sm:$0xff] }
  0x20   :  { %s454_s6 = sld [smem:[#allocation2 + $0x81]]  ;;  %v261_v1 = vld [vmem:[#allocation7 + $0x80] sm:$0xff]  ;;  %v262_v3 = vld [vmem:[#allocation7 + $0x88] sm:$0xff]  ;;  %v263_v14 = vld [vmem:[#allocation7 + $0x90] sm:$0xff] }
  0x21   :  { %s92_s7 = sld [smem:[#allocation2]]  ;;  %v230_v23 = vld [vmem:[#allocation7 + $0x18] sm:$0xff]  ;;  %v231_v31 = vld [vmem:[#allocation7 + $0x20] sm:$0xff]  ;;  %v232_v39 = vld [vmem:[#allocation7 + $0x28] sm:$0xff] }
  0x22   :  { %s452_s8 = sld [smem:[#allocation2 + $0x1]]  ;;  %v264_v24 = vld [vmem:[#allocation7 + $0x98] sm:$0xff]  ;;  %v265_v32 = vld [vmem:[#allocation7 + $0xa0] sm:$0xff]  ;;  %v266_v40 = vld [vmem:[#allocation7 + $0xa8] sm:$0xff] }
  0x23   :  { %v233_v47 = vld [vmem:[#allocation7 + $0x30] sm:$0xff]  ;;  %v234_v55 = vld [vmem:[#allocation7 + $0x38] sm:$0xff]  ;;  %v235_v63 = vld [vmem:[#allocation7 + $0x40] sm:$0xff]  ;;  %s455_s2 = sld [smem:[#allocation6 + $0x1]] }
  0x24   :  { %v267_v48 = vld [vmem:[#allocation7 + $0xb0] sm:$0xff]  ;;  %v268_v56 = vld [vmem:[#allocation7 + $0xb8] sm:$0xff]  ;;  %s193_s9 = sld [smem:[#allocation6]] }
  0x25   :  { %v531_v4 = vstv %s453_s5 }
  0x26   :  { %v245_v5 = vmul.f32 %v531_v4, %v227_v0  ;;  %v534_v6 = vstv %s454_s6  ;;  %v246_v9 = vmul.f32 %v531_v4, %v228_v2  ;;  %v247_v21 = vmul.f32 %v531_v4, %v229_v13 }
  0x27   :  { %v279_v7 = vmul.f32 %v534_v6, %v261_v1  ;;  %v537_v8 = vstv %s92_s7  ;;  %v280_v10 = vmul.f32 %v534_v6, %v262_v3  ;;  %v281_v22 = vmul.f32 %v534_v6, %v263_v14 }
  0x28   :  { %v94_v11 = vmul.f32 %v227_v0, %v537_v8  ;;  %v542_v12 = vstv %s452_s8  ;;  %v95_v17 = vmul.f32 %v228_v2, %v537_v8  ;;  %v96_v26 = vmul.f32 %v229_v13, %v537_v8  ;;  %v269_v0 = vld [vmem:[#allocation7 + $0xc0] sm:$0xff] }
  0x29   :  { %v295_v15 = vadd.f32 %v279_v7, %v245_v5  ;;  %v129_v16 = vmul.f32 %v261_v1, %v542_v12  ;;  %v130_v18 = vmul.f32 %v262_v3, %v542_v12  ;;  %v296_v20 = vadd.f32 %v280_v10, %v246_v9  ;;  %v236_v10 = vld [vmem:[#allocation7 + $0x48] sm:$0xff] }
  0x2a   :  { %v131_v27 = vmul.f32 %v263_v14, %v542_v12  ;;  %v297_v28 = vadd.f32 %v281_v22, %v247_v21  ;;  %v248_v29 = vmul.f32 %v531_v4, %v230_v23  ;;  %v282_v30 = vmul.f32 %v534_v6, %v264_v24 }
  0x2b   :  { %311 = vxpose.xlu1.b32.start [1/16] (narrow) %v295_v15, 32  ;;  %v145_v19 = vadd.f32 %v129_v16, %v94_v11  ;;  %v146_v25 = vadd.f32 %v130_v18, %v95_v17  ;;  %v97_v34 = vmul.f32 %v230_v23, %v537_v8  ;;  %v132_v35 = vmul.f32 %v264_v24, %v542_v12  ;;  %v270_v11 = vld [vmem:[#allocation7 + $0xc8] sm:$0xff] }
  0x2c   :  { %v147_v33 = vadd.f32 %v131_v27, %v96_v26  ;;  %v298_v36 = vadd.f32 %v282_v30, %v248_v29  ;;  %v249_v37 = vmul.f32 %v531_v4, %v231_v31  ;;  %v283_v38 = vmul.f32 %v534_v6, %v265_v32  ;;  %v238_v27 = vld [vmem:[#allocation7 + $0x58] sm:$0xff] }
  0x2d   :  { %161 = vxpose.xlu0.b32.start [1/16] (narrow) %v145_v19, 32  ;;  %v148_v41 = vadd.f32 %v132_v35, %v97_v34  ;;  %v98_v42 = vmul.f32 %v231_v31, %v537_v8  ;;  %v133_v43 = vmul.f32 %v265_v32, %v542_v12  ;;  %v250_v45 = vmul.f32 %v531_v4, %v232_v39  ;;  %v237_v19 = vld [vmem:[#allocation7 + $0x50] sm:$0xff]  ;;  %v239_v35 = vld [vmem:[#allocation7 + $0x60] sm:$0xff] }
  0x2e   :  { %v299_v44 = vadd.f32 %v283_v38, %v249_v37  ;;  %v284_v46 = vmul.f32 %v534_v6, %v266_v40  ;;  %v99_v50 = vmul.f32 %v232_v39, %v537_v8  ;;  %v134_v51 = vmul.f32 %v266_v40, %v542_v12 }
  0x2f   :  { %312 = vxpose.xlu1.b32.cont [2/16] (narrow) %v296_v20, 32  ;;  %v149_v49 = vadd.f32 %v133_v43, %v98_v42  ;;  %v251_v53 = vmul.f32 %v531_v4, %v233_v47  ;;  %v285_v54 = vmul.f32 %v534_v6, %v267_v48  ;;  %v100_v58 = vmul.f32 %v233_v47, %v537_v8  ;;  %v271_v20 = vld [vmem:[#allocation7 + $0xd0] sm:$0xff]  ;;  %v240_v43 = vld [vmem:[#allocation7 + $0x68] sm:$0xff] }
  0x30   :  { %v300_v52 = vadd.f32 %v284_v46, %v250_v45  ;;  %v150_v57 = vadd.f32 %v134_v51, %v99_v50  ;;  %v135_v59 = vmul.f32 %v267_v48, %v542_v12  ;;  %v252_v61 = vmul.f32 %v531_v4, %v234_v55  ;;  %v241_v51 = vld [vmem:[#allocation7 + $0x70] sm:$0xff] }
  0x31   :  { %162 = vxpose.xlu0.b32.cont [2/16] (narrow) %v146_v25, 32  ;;  %v301_v60 = vadd.f32 %v285_v54, %v251_v53  ;;  %v286_v62 = vmul.f32 %v534_v6, %v268_v56  ;;  %v101_v2 = vmul.f32 %v234_v55, %v537_v8  ;;  %v136_v3 = vmul.f32 %v268_v56, %v542_v12 }
  0x32   :  { %v151_v1 = vadd.f32 %v135_v59, %v100_v58  ;;  %v253_v7 = vmul.f32 %v531_v4, %v235_v63  ;;  %v287_v9 = vmul.f32 %v534_v6, %v269_v0  ;;  %v102_v14 = vmul.f32 %v235_v63, %v537_v8  ;;  %v242_v59 = vld [vmem:[#allocation7 + $0x78] sm:$0xff] }
  0x33   :  { %313 = vxpose.xlu1.b32.cont [3/16] (narrow) %v297_v28, 32  ;;  %v302_v5 = vadd.f32 %v286_v62, %v252_v61  ;;  %v152_v13 = vadd.f32 %v136_v3, %v101_v2  ;;  %v137_v15 = vmul.f32 %v269_v0, %v542_v12  ;;  %v254_v17 = vmul.f32 %v531_v4, %v236_v10  ;;  %v272_v28 = vld [vmem:[#allocation7 + $0xd8] sm:$0xff] }
  0x34   :  { %v303_v16 = vadd.f32 %v287_v9, %v253_v7  ;;  %v288_v18 = vmul.f32 %v534_v6, %v270_v11  ;;  %v103_v22 = vmul.f32 %v236_v10, %v537_v8  ;;  %v138_v23 = vmul.f32 %v270_v11, %v542_v12 }
  0x35   :  { %163 = vxpose.xlu0.b32.cont [3/16] (narrow) %v147_v33, 32  ;;  %v153_v21 = vadd.f32 %v137_v15, %v102_v14  ;;  %v255_v25 = vmul.f32 %v531_v4, %v237_v19  ;;  %v289_v26 = vmul.f32 %v534_v6, %v271_v20  ;;  %v104_v30 = vmul.f32 %v237_v19, %v537_v8 }
  0x36   :  { %v304_v24 = vadd.f32 %v288_v18, %v254_v17  ;;  %v154_v29 = vadd.f32 %v138_v23, %v103_v22  ;;  %v139_v31 = vmul.f32 %v271_v20, %v542_v12  ;;  %v256_v33 = vmul.f32 %v531_v4, %v238_v27 }
  0x37   :  { %314 = vxpose.xlu1.b32.cont [4/16] (narrow) %v298_v36, 32  ;;  %v305_v32 = vadd.f32 %v289_v26, %v255_v25  ;;  %v290_v34 = vmul.f32 %v534_v6, %v272_v28  ;;  %v273_v36 = vld [vmem:[#allocation7 + $0xe0] sm:$0xff]  ;;  %v105_v38 = vmul.f32 %v238_v27, %v537_v8  ;;  %v140_v39 = vmul.f32 %v272_v28, %v542_v12 }
  0x38   :  { %v155_v37 = vadd.f32 %v139_v31, %v104_v30  ;;  %v291_v42 = vmul.f32 %v534_v6, %v273_v36  ;;  %v106_v46 = vmul.f32 %v239_v35, %v537_v8  ;;  %v141_v47 = vmul.f32 %v273_v36, %v542_v12 }
  0x39   :  { %164 = vxpose.xlu0.b32.cont [4/16] (narrow) %v148_v41, 32  ;;  %v306_v40 = vadd.f32 %v290_v34, %v256_v33  ;;  %v257_v41 = vmul.f32 %v531_v4, %v239_v35  ;;  %v156_v45 = vadd.f32 %v140_v39, %v105_v38  ;;  %v107_v54 = vmul.f32 %v240_v43, %v537_v8 }
  0x3a   :  { %v157_v53 = vadd.f32 %v141_v47, %v106_v46  ;;  %v108_v62 = vmul.f32 %v241_v51, %v537_v8  ;;  %v344_v11 = vstv %s455_s2  ;;  %v194_v14 = vstv %s193_s9 }
  0x3b   :  { %315 = vxpose.xlu1.b32.cont [5/16] (narrow) %v299_v44, 32  ;;  %v274_v44 = vld [vmem:[#allocation7 + $0xe8] sm:$0xff]  ;;  %v307_v48 = vadd.f32 %v291_v42, %v257_v41 }
  0x3c   :  { %v292_v50 = vmul.f32 %v534_v6, %v274_v44  ;;  %v142_v55 = vmul.f32 %v274_v44, %v542_v12 }
  0x3d   :  { %165 = vxpose.xlu0.b32.cont [5/16] (narrow) %v149_v49, 32  ;;  %v258_v49 = vmul.f32 %v531_v4, %v240_v43 }
  0x3e   :  { %v158_v61 = vadd.f32 %v142_v55, %v107_v54 }
  0x3f   :  { %316 = vxpose.xlu1.b32.cont [6/16] (narrow) %v300_v52, 32  ;;  %v275_v52 = vld [vmem:[#allocation7 + $0xf0] sm:$0xff]  ;;  %v308_v56 = vadd.f32 %v292_v50, %v258_v49 }
  0x40   :  { %v293_v58 = vmul.f32 %v534_v6, %v275_v52  ;;  %v143_v63 = vmul.f32 %v275_v52, %v542_v12 }
  0x41   :  { %166 = vxpose.xlu0.b32.cont [6/16] (narrow) %v150_v57, 32  ;;  %v259_v57 = vmul.f32 %v531_v4, %v241_v51 }
  0x42   :  { %v159_v3 = vadd.f32 %v143_v63, %v108_v62 }
  0x43   :  { %317 = vxpose.xlu1.b32.cont [7/16] (narrow) %v301_v60, 32  ;;  %v276_v60 = vld [vmem:[#allocation7 + $0xf8] sm:$0xff]  ;;  %v309_v0 = vadd.f32 %v293_v58, %v259_v57 }
  0x44   :  { %v294_v2 = vmul.f32 %v534_v6, %v276_v60  ;;  %v144_v7 = vmul.f32 %v276_v60, %v542_v12 }
  0x45   :  { %167 = vxpose.xlu0.b32.cont [7/16] (narrow) %v151_v1, 32  ;;  %v260_v1 = vmul.f32 %v531_v4, %v242_v59 }
  0x47   :  { %318 = vxpose.xlu1.b32.cont [8/16] (narrow) %v302_v5, 32  ;;  %v109_v5 = vmul.f32 %v242_v59, %v537_v8  ;;  %v310_v9 = vadd.f32 %v294_v2, %v260_v1 }
  0x49   :  { %168 = vxpose.xlu0.b32.cont [8/16] (narrow) %v152_v13, 32  ;;  %v160_v10 = vadd.f32 %v144_v7, %v109_v5 }
  0x4b   :  { %319 = vxpose.xlu1.b32.cont [9/16] (narrow) %v303_v16, 32 }
  0x4d   :  { %169 = vxpose.xlu0.b32.cont [9/16] (narrow) %v153_v21, 32 }
  0x4f   :  { %320 = vxpose.xlu1.b32.cont [10/16] (narrow) %v304_v24, 32 }
  0x51   :  { %170 = vxpose.xlu0.b32.cont [10/16] (narrow) %v154_v29, 32 }
  0x53   :  { %321 = vxpose.xlu1.b32.cont [11/16] (narrow) %v305_v32, 32 }
  0x55   :  { %171 = vxpose.xlu0.b32.cont [11/16] (narrow) %v155_v37, 32 }
  0x57   :  { %322 = vxpose.xlu1.b32.cont [12/16] (narrow) %v306_v40, 32 }
  0x59   :  { %172 = vxpose.xlu0.b32.cont [12/16] (narrow) %v156_v45, 32 }
  0x5b   :  { %323 = vxpose.xlu1.b32.cont [13/16] (narrow) %v307_v48, 32 }
  0x5d   :  { %173 = vxpose.xlu0.b32.cont [13/16] (narrow) %v157_v53, 32 }
  0x5f   :  { %324 = vxpose.xlu1.b32.cont [14/16] (narrow) %v308_v56, 32 }
  0x61   :  { %174 = vxpose.xlu0.b32.cont [14/16] (narrow) %v158_v61, 32 }
  0x63   :  { %325 = vxpose.xlu1.b32.cont [15/16] (narrow) %v309_v0, 32 }
  0x65   :  { %175 = vxpose.xlu0.b32.cont [15/16] (narrow) %v159_v3, 32 }
  0x67   :  { %326 = vxpose.xlu1.b32.end [16/16] (narrow) %v310_v9, 32 }
  0x69   :  { %176 = vxpose.xlu0.b32.end [16/16] (narrow) %v160_v10, 32 }
  0xa7   :  { %v327_v13 = vpop.trf.xlu1 }
  0xa8   :  { %v345_v4 = vadd.f32 %v344_v11, %v327_v13 }
  0xa9   :  { %v177_v15 = vpop.trf.xlu0 }
  0xaa   :  { %431 = vst [vmem:[%s630_s3 + $0x20] sm:$0xff] %v345_v4  ;;  %v195_v6 = vadd.f32 %v194_v14, %v177_v15 }
  0xab   :  { %v328_v8 = vpop.trf.xlu1 }
  0xac   :  { %423 = vst [vmem:[%s630_s3] sm:$0xff] %v195_v6  ;;  %v346_v12 = vadd.f32 %v344_v11, %v328_v8 }
  0xad   :  { %v178_v16 = vpop.trf.xlu0 }
  0xae   :  { %433 = vst [vmem:[%s630_s3 + $0x28] sm:$0xff] %v346_v12  ;;  %v196_v17 = vadd.f32 %v194_v14, %v178_v16 }
  0xaf   :  { %v329_v18 = vpop.trf.xlu1 }
  0xb0   :  { %425 = vst [vmem:[%s630_s3 + $0x8] sm:$0xff] %v196_v17  ;;  %v347_v19 = vadd.f32 %v344_v11, %v329_v18 }
  0xb1   :  { %v179_v20 = vpop.trf.xlu0 }
  0xb2   :  { %435 = vst [vmem:[%s630_s3 + $0x30] sm:$0xff] %v347_v19  ;;  %v197_v21 = vadd.f32 %v194_v14, %v179_v20 }
  0xb3   :  { %v330_v22 = vpop.trf.xlu1 }
  0xb4   :  { %427 = vst [vmem:[%s630_s3 + $0x10] sm:$0xff] %v197_v21  ;;  %v348_v23 = vadd.f32 %v344_v11, %v330_v22 }
  0xb5   :  { %v180_v24 = vpop.trf.xlu0 }
  0xb6   :  { %437 = vst [vmem:[%s630_s3 + $0x38] sm:$0xff] %v348_v23  ;;  %v198_v25 = vadd.f32 %v194_v14, %v180_v24 }
  0xb8   :  { %429 = vst [vmem:[%s630_s3 + $0x18] sm:$0xff] %v198_v25 }
  0xb9   :  { %443 = vsyncpa [#allocation3], 1 }
  0xba   :  { %444 = vsyncpa [#allocation4], 1 }
  0xbb   :  { %445 = vsyncpa [#allocation5], 1 }

</bundles_post_ra>
